<compile_context>
chip_gen: v6e
topology: v6e:2x2x1
jax: 0.10.0
libtpu: 0.0.40
codegen_flags: <defaults>
</compile_context>

<pallas_src>
import functools

import jax
import jax.numpy as jnp
from jax.experimental import pallas as pl
from jax.experimental.pallas import tpu as pltpu

IN_FEATURES = 20
OUT_FEATURES = 10

# Lane-axis batch tile cap: big enough to amortize per-step overhead and reach
# the HBM roofline, small enough to double-buffer comfortably in VMEM on every
# generation ([20, 8192] f32 input tile ~= 0.64 MiB per buffer).
MAX_BATCH_TILE = 8192


def _linear_fm_kernel(x_ref, w_ref, b_ref, o_ref):
    # Feature-major tiles:
    #   x_ref: [IN, TB]   w_ref: [OUT, IN]   b_ref: [OUT, 1]   o_ref: [OUT, TB]
    # Batch lives on the lane axis -> lane-dense load of x and lane-dense
    # (unmasked) store of o.  MXU matmul, f32 accumulate, bias broadcast add.
    acc = jnp.dot(w_ref[...], x_ref[...], preferred_element_type=jnp.float32)
    o_ref[...] = (acc + b_ref[...]).astype(o_ref.dtype)


@functools.partial(jax.jit, static_argnames=("batch_tile",))
def network_c_forward(x, w, b, *, batch_tile=None):
    """y = x @ w.T + b   (PyTorch nn.Linear(20, 10) forward).

    x: [B, IN]   w: [OUT, IN]   b: [OUT]   ->   y: [B, OUT]
    """
    B = x.shape[0]
    dtype = x.dtype

    # Feature-major layout: batch on the lane axis.
    x_fm = x.T                               # [IN, B]
    b_fm = b.reshape(OUT_FEATURES, 1)        # [OUT, 1], broadcast along lanes

    # 128-aligned batch tile, capped for VMEM headroom on all generations.
    if batch_tile is None:
        batch_tile = min(MAX_BATCH_TILE, ((B + 127) // 128) * 128)
    Bp = ((B + batch_tile - 1) // batch_tile) * batch_tile
    if Bp != B:
        x_fm = jnp.pad(x_fm, ((0, 0), (0, Bp - B)))

    grid = (Bp // batch_tile,)

    itemsize = jnp.dtype(dtype).itemsize
    cost = pl.CostEstimate(
        flops=2 * B * IN_FEATURES * OUT_FEATURES,
        transcendentals=0,
        bytes_accessed=(B * IN_FEATURES
                        + OUT_FEATURES * IN_FEATURES
                        + OUT_FEATURES
                        + B * OUT_FEATURES) * itemsize,
    )

    y_fm = pl.pallas_call(
        _linear_fm_kernel,
        out_shape=jax.ShapeDtypeStruct((OUT_FEATURES, Bp), dtype),
        grid=grid,
        in_specs=[
            # x: tiled along the batch/lane axis.
            pl.BlockSpec((IN_FEATURES, batch_tile), lambda i: (0, i)),
            # weight and bias: whole (tiny) arrays, resident across the grid.
            pl.BlockSpec((OUT_FEATURES, IN_FEATURES), lambda i: (0, 0)),
            pl.BlockSpec((OUT_FEATURES, 1), lambda i: (0, 0)),
        ],
        out_specs=pl.BlockSpec((OUT_FEATURES, batch_tile), lambda i: (0, i)),
        compiler_params=pltpu.CompilerParams(
            dimension_semantics=("parallel",),
        ),
        cost_estimate=cost,
    )(x_fm, w, b_fm)

    # Drop batch padding and return to PyTorch's [B, OUT] layout.
    return y_fm[:, :B].T


if __name__ == "__main__":
    key = jax.random.PRNGKey(0)
    kx, kw, kb, kx2 = jax.random.split(key, 4)

    # Deterministic parameter init mimicking PyTorch nn.Linear default:
    # U(-1/sqrt(in_features), 1/sqrt(in_features))
    bound = 1.0 / (IN_FEATURES ** 0.5)
    w = jax.random.uniform(kw, (OUT_FEATURES, IN_FEATURES),
                           minval=-bound, maxval=bound, dtype=jnp.float32)
    b = jax.random.uniform(kb, (OUT_FEATURES,),
                           minval=-bound, maxval=bound, dtype=jnp.float32)

    # Small batch (matches the module's usage scale).
    B = 8
    x = jax.random.normal(kx, (B, IN_FEATURES), dtype=jnp.float32)
    y = network_c_forward(x, w, b)
    jax.block_until_ready(y)
    y_ref = x @ w.T + b
    assert y.shape == (B, OUT_FEATURES)
    assert jnp.allclose(y, y_ref, atol=1e-5, rtol=1e-5)

    # Also exercise the multi-step grid + padding path (batch not a multiple
    # of the tile, more than one grid step).
    B2 = 300
    x2 = jax.random.normal(kx2, (B2, IN_FEATURES), dtype=jnp.float32)
    y2 = network_c_forward(x2, w, b, batch_tile=128)
    jax.block_until_ready(y2)
    y2_ref = x2 @ w.T + b
    assert y2.shape == (B2, OUT_FEATURES)
    assert jnp.allclose(y2, y2_ref, atol=1e-5, rtol=1e-5)

    print("KERNEL_OK")
</pallas_src>

<mosaic_0001>
module attributes {stable_mosaic.version = 11 : i64} {
  func.func @_linear_fm_kernel(%arg0: i32, %arg1: memref<20x128xf32, #tpu.memory_space<vmem>>, %arg2: memref<10x20xf32, #tpu.memory_space<vmem>>, %arg3: memref<10x1xf32, #tpu.memory_space<vmem>>, %arg4: memref<10x128xf32, #tpu.memory_space<vmem>>) attributes {dimension_semantics = [#tpu.dimension_semantics<parallel>], iteration_bounds = array<i64: 1>, scalar_prefetch = 0 : i64, scratch_operands = 0 : i64, tpu.core_type = #tpu.core_type<tc>, window_params = [{transform_indices = @transform_0, window_bounds = array<i64: 20, 128>}, {pipeline_mode = #tpu.pipeline_mode<synchronous>, transform_indices = @transform_1, window_bounds = array<i64: 10, 20>}, {pipeline_mode = #tpu.pipeline_mode<synchronous>, transform_indices = @transform_2, window_bounds = array<i64: 10, 1>}, {transform_indices = @transform_3, window_bounds = array<i64: 10, 128>}]} {
    %c0 = arith.constant 0 : index
    %c0_0 = arith.constant 0 : index
    %0 = vector.load %arg2[%c0, %c0_0] : memref<10x20xf32, #tpu.memory_space<vmem>>, vector<10x20xf32>
    %c0_1 = arith.constant 0 : index
    %c0_2 = arith.constant 0 : index
    %1 = vector.load %arg1[%c0_1, %c0_2] : memref<20x128xf32, #tpu.memory_space<vmem>>, vector<20x128xf32>
    %cst = arith.constant dense<0.000000e+00> : vector<10x128xf32>
    %2 = tpu.matmul %0, %1, %cst {dimension_numbers = #tpu.dot_dimension_numbers<[1], [0], [0], [1], [0, 0, 1, 1], [], []>} : vector<10x20xf32>, vector<20x128xf32>, vector<10x128xf32> -> vector<10x128xf32>
    %c0_3 = arith.constant 0 : index
    %c0_4 = arith.constant 0 : index
    %3 = vector.load %arg3[%c0_3, %c0_4] : memref<10x1xf32, #tpu.memory_space<vmem>>, vector<10x1xf32>
    %4 = vector.broadcast %3 : vector<10x1xf32> to vector<10x128xf32>
    %5 = arith.addf %2, %4 : vector<10x128xf32>
    %c0_5 = arith.constant 0 : index
    %c0_6 = arith.constant 0 : index
    %6 = vector.load %arg4[%c0_5, %c0_6] : memref<10x128xf32, #tpu.memory_space<vmem>>, vector<10x128xf32>
    tpu.vector_store %arg4[%c0_5, %c0_6], %5 {strides = array<i32>} : memref<10x128xf32, #tpu.memory_space<vmem>>, vector<10x128xf32>,
    return
  }
  func.func @transform_0(%arg0: i32) -> (i32, i32) {
    %c0_i32 = arith.constant 0 : i32
    %c0_i32_0 = arith.constant 0 : i32
    return %c0_i32, %arg0 : i32, i32
  }
  func.func @transform_1(%arg0: i32) -> (i32, i32) {
    %c0_i32 = arith.constant 0 : i32
    %c0_i32_0 = arith.constant 0 : i32
    %c0_i32_1 = arith.constant 0 : i32
    return %c0_i32, %c0_i32_0 : i32, i32
  }
  func.func @transform_2(%arg0: i32) -> (i32, i32) {
    %c0_i32 = arith.constant 0 : i32
    %c0_i32_0 = arith.constant 0 : i32
    %c0_i32_1 = arith.constant 0 : i32
    return %c0_i32, %c0_i32_0 : i32, i32
  }
  func.func @transform_3(%arg0: i32) -> (i32, i32) {
    %c0_i32 = arith.constant 0 : i32
    %c0_i32_0 = arith.constant 0 : i32
    return %c0_i32, %arg0 : i32, i32
  }
}

</mosaic_0001>

<bundles_post_ra>
// kernel: network_c_forward.1
= control target key start
LH: loop header
LB: loop body
LE: loop exit
PB: predicated region body
PF: predicated region fallthrough
CT: control target
= control target key end

     0   :  { %vm38_vm0 = vcmask 1043456   ;;  %vm31_vm1 = vcmask 162816   ;;  %v142_v2 = vmov 0   ;;  %s192_s0 = inlined_call_operand.vmem [shape: f32[20,128], index: 0, kind: input, shape index: {}]   ;;  %s193_s1 = inlined_call_operand.vmem [shape: f32[10,20], index: 1, kind: input, shape index: {}]   ;;  %s194_s2 = inlined_call_operand.vmem [shape: f32[10,1], index: 2, kind: input, shape index: {}]   ;;  %s195_s3 = inlined_call_operand.vmem [shape: f32[10,128], index: 3, kind: output, shape index: {}]  }
   0x1   :  { %v18_v0 = vld [vmem:[%s192_s0 + $0x10] sm:$0xf]  ;;  %v17_v1 = vld [vmem:[%s192_s0 + $0x8] sm:$0xff]  ;;  %141 = vset.pattern.permute.xlu0 %v142_v2  ;;  %v14_v3 = vld [vmem:[%s193_s1] sm:$0xff] }
   0x2   :  { %131 = vmatprep.subr.msk.mxu0 %vm38_vm0, %v18_v0  ;;  %v19_v4 = vld [vmem:[%s194_s2] sm:$0xff]  ;;  %137 = vmatprep.mubr.msk.f32.mxu0 %vm31_vm1, %v14_v3  ;;  %v15_v6 = vld [vmem:[%s193_s1 + $0x8] sm:$0x3] }
   0x3   :  { %132 = vmatpush3.msk.msra.mxu0 %vm38_vm0, %v18_v0  ;;  %v16_v5 = vld [vmem:[%s192_s0] sm:$0xff]  ;;  %23 = vperm.xlu0 %141, %v19_v4   ;;  %v20_v7 = vld [vmem:[%s194_s2 + $0x8] sm:$0x3] }
   0x4   :  { %133 = vmatprep.subr.mxu0 %v17_v1 }
   0x5   :  { %134 = vmatpush3.msra.mxu0 %v17_v1 }
   0x6   :  { %135 = vmatprep.subr.mxu0 %v16_v5 }
   0x7   :  { %136 = vmatpush3.msra.mxu0 %v16_v5  ;;  %28 = vperm.xlu0 %141, %v20_v7  }
   0x8   :  { %138 = vmatmul.mubr.msk.f32.vlgmr.msra.gmra.mxu0 %vm31_vm1, %v15_v6 }
  0x7e   :  { %v24_v8 = vpop.permute.xlu0 %23 }
  0x82   :  { %v29_v9 = vpop.permute.xlu0 %28 }
  0xc8   :  { %v139_v10 = vpop.f32.mrf.mxu0 }
  0xc9   :  { %v114_v11 = vadd.f32 %v139_v10, %v29_v9 }
  0xca   :  { %v108_v12 = vpop.f32.mrf.mxu0 }
  0xcb   :  { %118 = vst [vmem:[%s195_s3 + $0x8] sm:$0x3] %v114_v11  ;;  %v109_v13 = vadd.f32 %v108_v12, %v24_v8 }
  0xcd   :  { %117 = vst [vmem:[%s195_s3] sm:$0xff] %v109_v13 }

</bundles_post_ra>
